<compile_context>
chip_gen: v6e
topology: v6e:2x2x1
jax: 0.10.0
libtpu: 0.0.40
codegen_flags: <defaults>
</compile_context>

<pallas_src>
import jax
import jax.numpy as jnp
from jax.experimental import pallas as pl
from jax.experimental.pallas import tpu as pltpu

_HIDDEN = 32


def _round_up(x, m):
    return (x + m - 1) // m * m


def _psd_ae_kernel(
    x_ref,              # (TB, D)   flattened input tile (native dtype)
    we1_ref, be1_ref,   # encoder Linear 1: (D, H), (1, H)
    we2_ref, be2_ref,   # encoder Linear 2: (H, E), (1, E)
    wd1_ref, bd1_ref,   # decoder Linear 1: (E, H), (1, H)
    wd2_ref, bd2_ref,   # decoder Linear 2: (H, D), (1, D)
    z_ref,              # (TB, E)   encoding output tile
    xhat_ref,           # (TB, D)   flat reconstruction output tile
):
    x = x_ref[...].astype(jnp.float32)

    # ---- encoder: Linear -> ReLU -> Linear -> ReLU (f32 accumulation) ----
    h = jnp.dot(x, we1_ref[...].astype(jnp.float32),
                preferred_element_type=jnp.float32)
    h = jnp.maximum(h + be1_ref[...].astype(jnp.float32), 0.0)

    z = jnp.dot(h, we2_ref[...].astype(jnp.float32),
                preferred_element_type=jnp.float32)
    z = jnp.maximum(z + be2_ref[...].astype(jnp.float32), 0.0)
    z_ref[...] = z.astype(z_ref.dtype)

    # ---- decoder: Linear -> ReLU -> Linear ----
    g = jnp.dot(z, wd1_ref[...].astype(jnp.float32),
                preferred_element_type=jnp.float32)
    g = jnp.maximum(g + bd1_ref[...].astype(jnp.float32), 0.0)

    xh = jnp.dot(g, wd2_ref[...].astype(jnp.float32),
                 preferred_element_type=jnp.float32)
    xh = xh + bd2_ref[...].astype(jnp.float32)
    xhat_ref[...] = xh.astype(xhat_ref.dtype)


def _vmem_capacity_bytes():
    try:
        return int(pltpu.get_tpu_info().vmem_capacity_bytes)
    except Exception:
        return 64 << 20  # conservative (v7x-sized) fallback


def _choose_batch_tile(B, D, vmem_capacity):
    """Batch tile: modest streamed tiles, >=4 grid steps when B allows."""
    small_vmem = vmem_capacity <= (80 << 20)             # v7x: 64 MiB per TC
    cap_elems = (1 << 20) if small_vmem else (4 << 20)   # ~4 / ~16 MiB tiles
    tb_cap = max(8, min(2048, cap_elems // max(D, 1)))
    tb_cap = max(8, (tb_cap // 8) * 8)
    # Aim for >= 4 grid steps (megacore sharding + DMA/compute overlap).
    tb_target = _round_up(max(1, pl.cdiv(B, 4)), 8)
    tb = min(tb_cap, tb_target)
    if tb >= B:
        tb = B   # single full-batch block (block dim == array dim is legal)
    return tb


def simple_psd_autoencoder_forward(X, params, *, out_dtype=jnp.bfloat16):
    """X: (B, n_channels, spectrum_size).  Returns (x_hat, z).

    x_hat / z are streamed back in `out_dtype` (bf16 by default: HBM-bound
    kernel, all matmuls accumulate in f32, only the final store is rounded).
    Pass out_dtype=jnp.float32 for full-precision outputs.
    """
    B, C, S = X.shape
    D = C * S
    we1, be1, we2, be2, wd1, bd1, wd2, bd2 = params
    H = we1.shape[1]
    E = we2.shape[1]

    x_flat = X.reshape(B, D)                 # free: no pad, no dtype cast

    vmem_capacity = _vmem_capacity_bytes()
    TB = _choose_batch_tile(B, D, vmem_capacity)
    grid = (pl.cdiv(B, TB),)

    w_list = [we1, be1, we2, be2, wd1, bd1, wd2, bd2]
    w_bytes = sum(int(w.size) * w.dtype.itemsize for w in w_list)
    x_e = jnp.dtype(X.dtype).itemsize
    o_e = jnp.dtype(out_dtype).itemsize

    flops = 4 * B * H * (D + E)              # 4 matmuls, 2*B*K*N each
    bytes_accessed = B * D * (x_e + o_e) + B * E * o_e + w_bytes
    cost = pl.CostEstimate(flops=int(flops), transcendentals=0,
                           bytes_accessed=int(bytes_accessed))

    row_spec = lambda shape: pl.BlockSpec(shape, lambda b: (b, 0))

    def run(single_buffer_weights):
        if single_buffer_weights:
            # Constant-index weights: one resident copy, no double buffering.
            const_spec = lambda shape: pl.BlockSpec(
                shape, lambda b: (0, 0), pipeline_mode=pl.Buffered(1))
            w_buffers = 1
        else:
            const_spec = lambda shape: pl.BlockSpec(shape, lambda b: (0, 0))
            w_buffers = 2

        # Double-buffered streamed tiles + resident weights + f32 scratch.
        vmem_needed = (2 * TB * (D * x_e + (D + E) * o_e)
                       + w_buffers * w_bytes
                       + 4 * TB * (D + E + 2 * H)
                       + (4 << 20))
        vmem_limit = int(min(max(vmem_needed, 32 << 20),
                             0.85 * vmem_capacity))

        return pl.pallas_call(
            _psd_ae_kernel,
            grid=grid,
            out_shape=(
                jax.ShapeDtypeStruct((B, E), out_dtype),
                jax.ShapeDtypeStruct((B, D), out_dtype),
            ),
            in_specs=[
                row_spec((TB, D)),
                const_spec((D, H)), const_spec((1, H)),
                const_spec((H, E)), const_spec((1, E)),
                const_spec((E, H)), const_spec((1, H)),
                const_spec((H, D)), const_spec((1, D)),
            ],
            out_specs=(
                row_spec((TB, E)),
                row_spec((TB, D)),
            ),
            compiler_params=pltpu.CompilerParams(
                dimension_semantics=("parallel",),
                vmem_limit_bytes=vmem_limit,
            ),
            cost_estimate=cost,
        )(x_flat, *w_list)

    try:
        z, xhat_flat = run(single_buffer_weights=True)
    except Exception:
        # TODO(synk): pl.Buffered(1) single-buffering rejected by this jax
        # version; falling back to default double-buffered weights.
        z, xhat_flat = run(single_buffer_weights=False)

    x_hat = xhat_flat.reshape(X.shape)
    return x_hat, z


def init_params(key, n_channels, spectrum_size, encoding_dim, hidden=_HIDDEN):
    """Deterministic synthetic parameters (Kaiming-ish uniform, like torch)."""
    D = n_channels * spectrum_size
    keys = jax.random.split(key, 8)

    def lin(kw, kb, fan_in, fan_out):
        bound = 1.0 / jnp.sqrt(fan_in)
        # stored as (in, out) so the kernel does x @ W + b
        w = jax.random.uniform(kw, (fan_in, fan_out), jnp.float32, -bound, bound)
        b = jax.random.uniform(kb, (1, fan_out), jnp.float32, -bound, bound)
        return w, b

    we1, be1 = lin(keys[0], keys[1], D, hidden)
    we2, be2 = lin(keys[2], keys[3], hidden, encoding_dim)
    wd1, bd1 = lin(keys[4], keys[5], encoding_dim, hidden)
    wd2, bd2 = lin(keys[6], keys[7], hidden, D)
    return (we1, be1, we2, be2, wd1, bd1, wd2, bd2)


def _reference_forward(X, params):
    """Pure-JAX f32 reference of the same forward, for a sanity check."""
    B, C, S = X.shape
    we1, be1, we2, be2, wd1, bd1, wd2, bd2 = params
    x = X.reshape((B, C * S))
    h = jnp.maximum(x @ we1 + be1, 0.0)
    z = jnp.maximum(h @ we2 + be2, 0.0)
    g = jnp.maximum(z @ wd1 + bd1, 0.0)
    xh = g @ wd2 + bd2
    return xh.reshape(X.shape), z


if __name__ == "__main__":
    # Small shapes consistent with the module: B=2, n_channels=4, spectrum=16.
    B, C, S, E = 2, 4, 16, 32

    key = jax.random.PRNGKey(0)
    kx, kp = jax.random.split(key)
    X = jax.random.normal(kx, (B, C, S), dtype=jnp.float32)
    params = init_params(kp, C, S, E)

    x_hat_ref, z_ref = _reference_forward(X, params)

    # f32 output path: tight check against the pure-JAX reference.
    x_hat32, z32 = simple_psd_autoencoder_forward(X, params,
                                                  out_dtype=jnp.float32)
    jax.block_until_ready((x_hat32, z32))
    assert x_hat32.shape == X.shape and z32.shape == (B, E)
    assert jnp.allclose(x_hat32, x_hat_ref, atol=1e-4, rtol=1e-4)
    assert jnp.allclose(z32, z_ref, atol=1e-4, rtol=1e-4)

    # Default bf16 streamed outputs (halved HBM write traffic, f32 math
    # inside the kernel): loose check.
    x_hat, z = simple_psd_autoencoder_forward(X, params)
    jax.block_until_ready((x_hat, z))
    assert x_hat.dtype == jnp.bfloat16 and z.dtype == jnp.bfloat16
    assert x_hat.shape == X.shape and z.shape == (B, E)
    assert jnp.allclose(x_hat.astype(jnp.float32), x_hat_ref,
                        atol=1e-2, rtol=1e-2)
    assert jnp.allclose(z.astype(jnp.float32), z_ref, atol=1e-2, rtol=1e-2)

    print("KERNEL_OK")
</pallas_src>

<mosaic_0001>
module attributes {stable_mosaic.version = 11 : i64} {
  func.func @_psd_ae_kernel(%arg0: i32, %arg1: memref<2x64xf32, #tpu.memory_space<vmem>>, %arg2: memref<64x32xf32, #tpu.memory_space<vmem>>, %arg3: memref<1x32xf32, #tpu.memory_space<vmem>>, %arg4: memref<32x32xf32, #tpu.memory_space<vmem>>, %arg5: memref<1x32xf32, #tpu.memory_space<vmem>>, %arg6: memref<32x32xf32, #tpu.memory_space<vmem>>, %arg7: memref<1x32xf32, #tpu.memory_space<vmem>>, %arg8: memref<32x64xf32, #tpu.memory_space<vmem>>, %arg9: memref<1x64xf32, #tpu.memory_space<vmem>>, %arg10: memref<2x32xf32, #tpu.memory_space<vmem>>, %arg11: memref<2x64xf32, #tpu.memory_space<vmem>>) attributes {dimension_semantics = [#tpu.dimension_semantics<parallel>], iteration_bounds = array<i64: 1>, scalar_prefetch = 0 : i64, scratch_operands = 0 : i64, tpu.core_type = #tpu.core_type<tc>, window_params = [{transform_indices = @transform_0, window_bounds = array<i64: 2, 64>}, {pipeline_mode = #tpu.pipeline_mode<synchronous>, transform_indices = @transform_1, window_bounds = array<i64: 64, 32>}, {pipeline_mode = #tpu.pipeline_mode<synchronous>, transform_indices = @transform_2, window_bounds = array<i64: 1, 32>}, {pipeline_mode = #tpu.pipeline_mode<synchronous>, transform_indices = @transform_3, window_bounds = array<i64: 32, 32>}, {pipeline_mode = #tpu.pipeline_mode<synchronous>, transform_indices = @transform_4, window_bounds = array<i64: 1, 32>}, {pipeline_mode = #tpu.pipeline_mode<synchronous>, transform_indices = @transform_5, window_bounds = array<i64: 32, 32>}, {pipeline_mode = #tpu.pipeline_mode<synchronous>, transform_indices = @transform_6, window_bounds = array<i64: 1, 32>}, {pipeline_mode = #tpu.pipeline_mode<synchronous>, transform_indices = @transform_7, window_bounds = array<i64: 32, 64>}, {pipeline_mode = #tpu.pipeline_mode<synchronous>, transform_indices = @transform_8, window_bounds = array<i64: 1, 64>}, {transform_indices = @transform_9, window_bounds = array<i64: 2, 32>}, {transform_indices = @transform_10, window_bounds = array<i64: 2, 64>}]} {
    %c0 = arith.constant 0 : index
    %c0_0 = arith.constant 0 : index
    %0 = vector.load %arg1[%c0, %c0_0] : memref<2x64xf32, #tpu.memory_space<vmem>>, vector<2x64xf32>
    %c0_1 = arith.constant 0 : index
    %c0_2 = arith.constant 0 : index
    %1 = vector.load %arg2[%c0_1, %c0_2] : memref<64x32xf32, #tpu.memory_space<vmem>>, vector<64x32xf32>
    %cst = arith.constant dense<0.000000e+00> : vector<2x32xf32>
    %2 = tpu.matmul %0, %1, %cst {dimension_numbers = #tpu.dot_dimension_numbers<[1], [0], [0], [1], [0, 0, 1, 1], [], []>} : vector<2x64xf32>, vector<64x32xf32>, vector<2x32xf32> -> vector<2x32xf32>
    %c0_3 = arith.constant 0 : index
    %c0_4 = arith.constant 0 : index
    %3 = vector.load %arg3[%c0_3, %c0_4] : memref<1x32xf32, #tpu.memory_space<vmem>>, vector<1x32xf32>
    %4 = vector.broadcast %3 : vector<1x32xf32> to vector<2x32xf32>
    %5 = arith.addf %2, %4 : vector<2x32xf32>
    %cst_5 = arith.constant 0.000000e+00 : f32
    %6 = vector.broadcast %cst_5 : f32 to vector<2x32xf32>
    %7 = arith.maximumf %5, %6 : vector<2x32xf32>
    %c0_6 = arith.constant 0 : index
    %c0_7 = arith.constant 0 : index
    %8 = vector.load %arg4[%c0_6, %c0_7] : memref<32x32xf32, #tpu.memory_space<vmem>>, vector<32x32xf32>
    %cst_8 = arith.constant dense<0.000000e+00> : vector<2x32xf32>
    %9 = tpu.matmul %7, %8, %cst_8 {dimension_numbers = #tpu.dot_dimension_numbers<[1], [0], [0], [1], [0, 0, 1, 1], [], []>} : vector<2x32xf32>, vector<32x32xf32>, vector<2x32xf32> -> vector<2x32xf32>
    %c0_9 = arith.constant 0 : index
    %c0_10 = arith.constant 0 : index
    %10 = vector.load %arg5[%c0_9, %c0_10] : memref<1x32xf32, #tpu.memory_space<vmem>>, vector<1x32xf32>
    %11 = vector.broadcast %10 : vector<1x32xf32> to vector<2x32xf32>
    %12 = arith.addf %9, %11 : vector<2x32xf32>
    %cst_11 = arith.constant 0.000000e+00 : f32
    %13 = vector.broadcast %cst_11 : f32 to vector<2x32xf32>
    %14 = arith.maximumf %12, %13 : vector<2x32xf32>
    %c0_12 = arith.constant 0 : index
    %c0_13 = arith.constant 0 : index
    %15 = vector.load %arg10[%c0_12, %c0_13] : memref<2x32xf32, #tpu.memory_space<vmem>>, vector<2x32xf32>
    tpu.vector_store %arg10[%c0_12, %c0_13], %14 {strides = array<i32>} : memref<2x32xf32, #tpu.memory_space<vmem>>, vector<2x32xf32>,
    %c0_14 = arith.constant 0 : index
    %c0_15 = arith.constant 0 : index
    %16 = vector.load %arg6[%c0_14, %c0_15] : memref<32x32xf32, #tpu.memory_space<vmem>>, vector<32x32xf32>
    %cst_16 = arith.constant dense<0.000000e+00> : vector<2x32xf32>
    %17 = tpu.matmul %14, %16, %cst_16 {dimension_numbers = #tpu.dot_dimension_numbers<[1], [0], [0], [1], [0, 0, 1, 1], [], []>} : vector<2x32xf32>, vector<32x32xf32>, vector<2x32xf32> -> vector<2x32xf32>
    %c0_17 = arith.constant 0 : index
    %c0_18 = arith.constant 0 : index
    %18 = vector.load %arg7[%c0_17, %c0_18] : memref<1x32xf32, #tpu.memory_space<vmem>>, vector<1x32xf32>
    %19 = vector.broadcast %18 : vector<1x32xf32> to vector<2x32xf32>
    %20 = arith.addf %17, %19 : vector<2x32xf32>
    %cst_19 = arith.constant 0.000000e+00 : f32
    %21 = vector.broadcast %cst_19 : f32 to vector<2x32xf32>
    %22 = arith.maximumf %20, %21 : vector<2x32xf32>
    %c0_20 = arith.constant 0 : index
    %c0_21 = arith.constant 0 : index
    %23 = vector.load %arg8[%c0_20, %c0_21] : memref<32x64xf32, #tpu.memory_space<vmem>>, vector<32x64xf32>
    %cst_22 = arith.constant dense<0.000000e+00> : vector<2x64xf32>
    %24 = tpu.matmul %22, %23, %cst_22 {dimension_numbers = #tpu.dot_dimension_numbers<[1], [0], [0], [1], [0, 0, 1, 1], [], []>} : vector<2x32xf32>, vector<32x64xf32>, vector<2x64xf32> -> vector<2x64xf32>
    %c0_23 = arith.constant 0 : index
    %c0_24 = arith.constant 0 : index
    %25 = vector.load %arg9[%c0_23, %c0_24] : memref<1x64xf32, #tpu.memory_space<vmem>>, vector<1x64xf32>
    %26 = vector.broadcast %25 : vector<1x64xf32> to vector<2x64xf32>
    %27 = arith.addf %24, %26 : vector<2x64xf32>
    %c0_25 = arith.constant 0 : index
    %c0_26 = arith.constant 0 : index
    %28 = vector.load %arg11[%c0_25, %c0_26] : memref<2x64xf32, #tpu.memory_space<vmem>>, vector<2x64xf32>
    tpu.vector_store %arg11[%c0_25, %c0_26], %27 {strides = array<i32>} : memref<2x64xf32, #tpu.memory_space<vmem>>, vector<2x64xf32>,
    return
  }
  func.func @transform_0(%arg0: i32) -> (i32, i32) {
    %c0_i32 = arith.constant 0 : i32
    %c0_i32_0 = arith.constant 0 : i32
    return %arg0, %c0_i32 : i32, i32
  }
  func.func @transform_1(%arg0: i32) -> (i32, i32) {
    %c0_i32 = arith.constant 0 : i32
    %c0_i32_0 = arith.constant 0 : i32
    %c0_i32_1 = arith.constant 0 : i32
    return %c0_i32, %c0_i32_0 : i32, i32
  }
  func.func @transform_2(%arg0: i32) -> (i32, i32) {
    %c0_i32 = arith.constant 0 : i32
    %c0_i32_0 = arith.constant 0 : i32
    %c0_i32_1 = arith.constant 0 : i32
    return %c0_i32, %c0_i32_0 : i32, i32
  }
  func.func @transform_3(%arg0: i32) -> (i32, i32) {
    %c0_i32 = arith.constant 0 : i32
    %c0_i32_0 = arith.constant 0 : i32
    %c0_i32_1 = arith.constant 0 : i32
    return %c0_i32, %c0_i32_0 : i32, i32
  }
  func.func @transform_4(%arg0: i32) -> (i32, i32) {
    %c0_i32 = arith.constant 0 : i32
    %c0_i32_0 = arith.constant 0 : i32
    %c0_i32_1 = arith.constant 0 : i32
    return %c0_i32, %c0_i32_0 : i32, i32
  }
  func.func @transform_5(%arg0: i32) -> (i32, i32) {
    %c0_i32 = arith.constant 0 : i32
    %c0_i32_0 = arith.constant 0 : i32
    %c0_i32_1 = arith.constant 0 : i32
    return %c0_i32, %c0_i32_0 : i32, i32
  }
  func.func @transform_6(%arg0: i32) -> (i32, i32) {
    %c0_i32 = arith.constant 0 : i32
    %c0_i32_0 = arith.constant 0 : i32
    %c0_i32_1 = arith.constant 0 : i32
    return %c0_i32, %c0_i32_0 : i32, i32
  }
  func.func @transform_7(%arg0: i32) -> (i32, i32) {
    %c0_i32 = arith.constant 0 : i32
    %c0_i32_0 = arith.constant 0 : i32
    %c0_i32_1 = arith.constant 0 : i32
    return %c0_i32, %c0_i32_0 : i32, i32
  }
  func.func @transform_8(%arg0: i32) -> (i32, i32) {
    %c0_i32 = arith.constant 0 : i32
    %c0_i32_0 = arith.constant 0 : i32
    %c0_i32_1 = arith.constant 0 : i32
    return %c0_i32, %c0_i32_0 : i32, i32
  }
  func.func @transform_9(%arg0: i32) -> (i32, i32) {
    %c0_i32 = arith.constant 0 : i32
    %c0_i32_0 = arith.constant 0 : i32
    return %arg0, %c0_i32 : i32, i32
  }
  func.func @transform_10(%arg0: i32) -> (i32, i32) {
    %c0_i32 = arith.constant 0 : i32
    %c0_i32_0 = arith.constant 0 : i32
    return %arg0, %c0_i32 : i32, i32
  }
}

module attributes {stable_mosaic.version = 11 : i64} {
  func.func @_psd_ae_kernel(%arg0: i32, %arg1: memref<2x64xf32, #tpu.memory_space<vmem>>, %arg2: memref<64x32xf32, #tpu.memory_space<vmem>>, %arg3: memref<1x32xf32, #tpu.memory_space<vmem>>, %arg4: memref<32x32xf32, #tpu.memory_space<vmem>>, %arg5: memref<1x32xf32, #tpu.memory_space<vmem>>, %arg6: memref<32x32xf32, #tpu.memory_space<vmem>>, %arg7: memref<1x32xf32, #tpu.memory_space<vmem>>, %arg8: memref<32x64xf32, #tpu.memory_space<vmem>>, %arg9: memref<1x64xf32, #tpu.memory_space<vmem>>, %arg10: memref<2x32xf32, #tpu.memory_space<vmem>>, %arg11: memref<2x64xf32, #tpu.memory_space<vmem>>) attributes {dimension_semantics = [#tpu.dimension_semantics<parallel>], iteration_bounds = array<i64: 1>, scalar_prefetch = 0 : i64, scratch_operands = 0 : i64, tpu.core_type = #tpu.core_type<tc>, window_params = [{transform_indices = @transform_0, window_bounds = array<i64: 2, 64>}, {pipeline_mode = #tpu.pipeline_mode<synchronous>, transform_indices = @transform_1, window_bounds = array<i64: 64, 32>}, {pipeline_mode = #tpu.pipeline_mode<synchronous>, transform_indices = @transform_2, window_bounds = array<i64: 1, 32>}, {pipeline_mode = #tpu.pipeline_mode<synchronous>, transform_indices = @transform_3, window_bounds = array<i64: 32, 32>}, {pipeline_mode = #tpu.pipeline_mode<synchronous>, transform_indices = @transform_4, window_bounds = array<i64: 1, 32>}, {pipeline_mode = #tpu.pipeline_mode<synchronous>, transform_indices = @transform_5, window_bounds = array<i64: 32, 32>}, {pipeline_mode = #tpu.pipeline_mode<synchronous>, transform_indices = @transform_6, window_bounds = array<i64: 1, 32>}, {pipeline_mode = #tpu.pipeline_mode<synchronous>, transform_indices = @transform_7, window_bounds = array<i64: 32, 64>}, {pipeline_mode = #tpu.pipeline_mode<synchronous>, transform_indices = @transform_8, window_bounds = array<i64: 1, 64>}, {transform_indices = @transform_9, window_bounds = array<i64: 2, 32>}, {transform_indices = @transform_10, window_bounds = array<i64: 2, 64>}]} {
    %c0 = arith.constant 0 : index
    %c0_0 = arith.constant 0 : index
    %0 = vector.load %arg1[%c0, %c0_0] : memref<2x64xf32, #tpu.memory_space<vmem>>, vector<2x64xf32>
    %c0_1 = arith.constant 0 : index
    %c0_2 = arith.constant 0 : index
    %1 = vector.load %arg2[%c0_1, %c0_2] : memref<64x32xf32, #tpu.memory_space<vmem>>, vector<64x32xf32>
    %cst = arith.constant dense<0.000000e+00> : vector<2x32xf32>
    %2 = tpu.matmul %0, %1, %cst {dimension_numbers = #tpu.dot_dimension_numbers<[1], [0], [0], [1], [0, 0, 1, 1], [], []>} : vector<2x64xf32>, vector<64x32xf32>, vector<2x32xf32> -> vector<2x32xf32>
    %c0_3 = arith.constant 0 : index
    %c0_4 = arith.constant 0 : index
    %3 = vector.load %arg3[%c0_3, %c0_4] : memref<1x32xf32, #tpu.memory_space<vmem>>, vector<1x32xf32>
    %4 = vector.broadcast %3 : vector<1x32xf32> to vector<2x32xf32>
    %5 = arith.addf %2, %4 : vector<2x32xf32>
    %cst_5 = arith.constant 0.000000e+00 : f32
    %6 = vector.broadcast %cst_5 : f32 to vector<2x32xf32>
    %7 = arith.maximumf %5, %6 : vector<2x32xf32>
    %c0_6 = arith.constant 0 : index
    %c0_7 = arith.constant 0 : index
    %8 = vector.load %arg4[%c0_6, %c0_7] : memref<32x32xf32, #tpu.memory_space<vmem>>, vector<32x32xf32>
    %cst_8 = arith.constant dense<0.000000e+00> : vector<2x32xf32>
    %9 = tpu.matmul %7, %8, %cst_8 {dimension_numbers = #tpu.dot_dimension_numbers<[1], [0], [0], [1], [0, 0, 1, 1], [], []>} : vector<2x32xf32>, vector<32x32xf32>, vector<2x32xf32> -> vector<2x32xf32>
    %c0_9 = arith.constant 0 : index
    %c0_10 = arith.constant 0 : index
    %10 = vector.load %arg5[%c0_9, %c0_10] : memref<1x32xf32, #tpu.memory_space<vmem>>, vector<1x32xf32>
    %11 = vector.broadcast %10 : vector<1x32xf32> to vector<2x32xf32>
    %12 = arith.addf %9, %11 : vector<2x32xf32>
    %cst_11 = arith.constant 0.000000e+00 : f32
    %13 = vector.broadcast %cst_11 : f32 to vector<2x32xf32>
    %14 = arith.maximumf %12, %13 : vector<2x32xf32>
    %c0_12 = arith.constant 0 : index
    %c0_13 = arith.constant 0 : index
    %15 = vector.load %arg10[%c0_12, %c0_13] : memref<2x32xf32, #tpu.memory_space<vmem>>, vector<2x32xf32>
    tpu.vector_store %arg10[%c0_12, %c0_13], %14 {strides = array<i32>} : memref<2x32xf32, #tpu.memory_space<vmem>>, vector<2x32xf32>,
    %c0_14 = arith.constant 0 : index
    %c0_15 = arith.constant 0 : index
    %16 = vector.load %arg6[%c0_14, %c0_15] : memref<32x32xf32, #tpu.memory_space<vmem>>, vector<32x32xf32>
    %cst_16 = arith.constant dense<0.000000e+00> : vector<2x32xf32>
    %17 = tpu.matmul %14, %16, %cst_16 {dimension_numbers = #tpu.dot_dimension_numbers<[1], [0], [0], [1], [0, 0, 1, 1], [], []>} : vector<2x32xf32>, vector<32x32xf32>, vector<2x32xf32> -> vector<2x32xf32>
    %c0_17 = arith.constant 0 : index
    %c0_18 = arith.constant 0 : index
    %18 = vector.load %arg7[%c0_17, %c0_18] : memref<1x32xf32, #tpu.memory_space<vmem>>, vector<1x32xf32>
    %19 = vector.broadcast %18 : vector<1x32xf32> to vector<2x32xf32>
    %20 = arith.addf %17, %19 : vector<2x32xf32>
    %cst_19 = arith.constant 0.000000e+00 : f32
    %21 = vector.broadcast %cst_19 : f32 to vector<2x32xf32>
    %22 = arith.maximumf %20, %21 : vector<2x32xf32>
    %c0_20 = arith.constant 0 : index
    %c0_21 = arith.constant 0 : index
    %23 = vector.load %arg8[%c0_20, %c0_21] : memref<32x64xf32, #tpu.memory_space<vmem>>, vector<32x64xf32>
    %cst_22 = arith.constant dense<0.000000e+00> : vector<2x64xf32>
    %24 = tpu.matmul %22, %23, %cst_22 {dimension_numbers = #tpu.dot_dimension_numbers<[1], [0], [0], [1], [0, 0, 1, 1], [], []>} : vector<2x32xf32>, vector<32x64xf32>, vector<2x64xf32> -> vector<2x64xf32>
    %c0_23 = arith.constant 0 : index
    %c0_24 = arith.constant 0 : index
    %25 = vector.load %arg9[%c0_23, %c0_24] : memref<1x64xf32, #tpu.memory_space<vmem>>, vector<1x64xf32>
    %26 = vector.broadcast %25 : vector<1x64xf32> to vector<2x64xf32>
    %27 = arith.addf %24, %26 : vector<2x64xf32>
    %c0_25 = arith.constant 0 : index
    %c0_26 = arith.constant 0 : index
    %28 = vector.load %arg11[%c0_25, %c0_26] : memref<2x64xf32, #tpu.memory_space<vmem>>, vector<2x64xf32>
    tpu.vector_store %arg11[%c0_25, %c0_26], %27 {strides = array<i32>} : memref<2x64xf32, #tpu.memory_space<vmem>>, vector<2x64xf32>,
    return
  }
  func.func @transform_0(%arg0: i32) -> (i32, i32) {
    %c0_i32 = arith.constant 0 : i32
    %c0_i32_0 = arith.constant 0 : i32
    return %arg0, %c0_i32 : i32, i32
  }
  func.func @transform_1(%arg0: i32) -> (i32, i32) {
    %c0_i32 = arith.constant 0 : i32
    %c0_i32_0 = arith.constant 0 : i32
    %c0_i32_1 = arith.constant 0 : i32
    return %c0_i32, %c0_i32_0 : i32, i32
  }
  func.func @transform_2(%arg0: i32) -> (i32, i32) {
    %c0_i32 = arith.constant 0 : i32
    %c0_i32_0 = arith.constant 0 : i32
    %c0_i32_1 = arith.constant 0 : i32
    return %c0_i32, %c0_i32_0 : i32, i32
  }
  func.func @transform_3(%arg0: i32) -> (i32, i32) {
    %c0_i32 = arith.constant 0 : i32
    %c0_i32_0 = arith.constant 0 : i32
    %c0_i32_1 = arith.constant 0 : i32
    return %c0_i32, %c0_i32_0 : i32, i32
  }
  func.func @transform_4(%arg0: i32) -> (i32, i32) {
    %c0_i32 = arith.constant 0 : i32
    %c0_i32_0 = arith.constant 0 : i32
    %c0_i32_1 = arith.constant 0 : i32
    return %c0_i32, %c0_i32_0 : i32, i32
  }
  func.func @transform_5(%arg0: i32) -> (i32, i32) {
    %c0_i32 = arith.constant 0 : i32
    %c0_i32_0 = arith.constant 0 : i32
    %c0_i32_1 = arith.constant 0 : i32
    return %c0_i32, %c0_i32_0 : i32, i32
  }
  func.func @transform_6(%arg0: i32) -> (i32, i32) {
    %c0_i32 = arith.constant 0 : i32
    %c0_i32_0 = arith.constant 0 : i32
    %c0_i32_1 = arith.constant 0 : i32
    return %c0_i32, %c0_i32_0 : i32, i32
  }
  func.func @transform_7(%arg0: i32) -> (i32, i32) {
    %c0_i32 = arith.constant 0 : i32
    %c0_i32_0 = arith.constant 0 : i32
    %c0_i32_1 = arith.constant 0 : i32
    return %c0_i32, %c0_i32_0 : i32, i32
  }
  func.func @transform_8(%arg0: i32) -> (i32, i32) {
    %c0_i32 = arith.constant 0 : i32
    %c0_i32_0 = arith.constant 0 : i32
    %c0_i32_1 = arith.constant 0 : i32
    return %c0_i32, %c0_i32_0 : i32, i32
  }
  func.func @transform_9(%arg0: i32) -> (i32, i32) {
    %c0_i32 = arith.constant 0 : i32
    %c0_i32_0 = arith.constant 0 : i32
    return %arg0, %c0_i32 : i32, i32
  }
  func.func @transform_10(%arg0: i32) -> (i32, i32) {
    %c0_i32 = arith.constant 0 : i32
    %c0_i32_0 = arith.constant 0 : i32
    return %arg0, %c0_i32 : i32, i32
  }
}

</mosaic_0001>

<bundles_post_ra>
// kernel: tpu_custom_call.1
= control target key start
LH: loop header
LB: loop body
LE: loop exit
PB: predicated region body
PF: predicated region fallthrough
CT: control target
= control target key end

     0   :  { %16 = vsyncpa [#allocation3], 0  ;;  %s754_s0 = inlined_call_operand.hbm [shape: f32[2,64], index: 0, kind: input, shape index: {}]   ;;  %s755_s1 = inlined_call_operand.vmem [shape: f32[64,32], index: 1, kind: input, shape index: {}]   ;;  %s756_s2 = inlined_call_operand.vmem [shape: f32[1,32], index: 2, kind: input, shape index: {}]   ;;  %s757_s3 = inlined_call_operand.vmem [shape: f32[32,32], index: 3, kind: input, shape index: {}]   ;;  %s758_s4 = inlined_call_operand.vmem [shape: f32[1,32], index: 4, kind: input, shape index: {}]   ;;  %s759_s5 = inlined_call_operand.vmem [shape: f32[32,32], index: 5, kind: input, shape index: {}]   ;;  %s760_s6 = inlined_call_operand.vmem [shape: f32[1,32], index: 6, kind: input, shape index: {}]   ;;  %s761_s7 = inlined_call_operand.vmem [shape: f32[32,64], index: 7, kind: input, shape index: {}]   ;;  %s762_s8 = inlined_call_operand.vmem [shape: f32[1,64], index: 8, kind: input, shape index: {}]   ;;  %s763_s9 = inlined_call_operand.hbm [shape: f32[2,32], index: 9, kind: output, shape index: {0}]   ;;  %s764_s10 = inlined_call_operand.hbm [shape: f32[2,64], index: 10, kind: output, shape index: {1}]  }
   0x1   :  { %17 = vsyncpa [#allocation4], 0 }
   0x2   :  { %18 = vsyncpa [#allocation7], 0  ;;  %s582_s13 = smov [#allocation2]  }
   0x3   :  { %s25_s14 = sshll.u32 %s582_s13, 4  ;;  %s26_s14 = int_to_ptr.vmem [resolvable:$true] %s25_s14 }
   0x4   :  { %s524_s15 = scalar_lea.vmem %s26_s14, 32  ;;  %p529_p1 = scmp.lt.s32.totalorder %s26_s14, %s26_s14 }
   0x5   :  { %p525_p0 = scmp.ne.s32.totalorder %s26_s14, %s524_s15  ;;  %p530_p2 = scmp.lt.s32.totalorder %s524_s15, %s524_s15 }
   0x7   :  { %p531_p3 = por %p530_p2, %p529_p1 }
   0x9   :  { %p532_p4 = pnand %p531_p3, %p525_p0 }
   0xb   :  { %535 = shalt.err (!%p532_p4)
}
   0xc   :  { %28 = dma.hbm_to_vmem [thread:$0]  %s754_s0, 32, %s26_s14, [#allocation3]  }
   0xd   :  { %576 = dma.done.wait [#allocation3], 32  }
   0xe   :  { %577 = vsyncadd [#allocation3], 4294967264  ;;  %v583_v0 = vmov 0.0   ;;  %vm584_vm0 = vmmov 0   ;;  %v56_v1 = vld [vmem:[%s755_s1 + $0x38] sm:$0xff]  ;;  %v55_v2 = vld [vmem:[%s755_s1 + $0x30] sm:$0xff] }
   0xf   :  { %459 = vmatprep.subr.mxu0 %v583_v0  ;;  %475 = vmatprep.mubr.msk.f32.mxu0 %vm584_vm0, %v583_v0  ;;  %v54_v3 = vld [vmem:[%s755_s1 + $0x28] sm:$0xff]  ;;  %v142_v4 = vld [vmem:[%s757_s3 + $0x18] sm:$0xff]  ;;  %v53_v5 = vld [vmem:[%s755_s1 + $0x20] sm:$0xff]  ;;  %vm64_vm1 = vcmask 523264   ;;  %vm150_vm2 = vcmask 261120   ;;  %vm225_vm3 = vcmask 254976  }
  0x10   :  { %478 = vmatprep.subr.mxu1 %v583_v0  ;;  %486 = vmatprep.mubr.msk.f32.mxu1 %vm584_vm0, %v583_v0  ;;  %v52_v6 = vld [vmem:[%s755_s1 + $0x18] sm:$0xff]  ;;  %v51_v7 = vld [vmem:[%s755_s1 + $0x10] sm:$0xff]  ;;  %v50_v8 = vld [vmem:[%s755_s1 + $0x8] sm:$0xff] }
  0x11   :  { %460 = vmatpush3.msra.mxu0 %v56_v1  ;;  %479 = vmatpush3.msra.mxu1 %v142_v4  ;;  %v49_v9 = vld [vmem:[%s755_s1] sm:$0xff]  ;;  %v141_v11 = vld [vmem:[%s757_s3 + $0x10] sm:$0xff]  ;;  %v140_v12 = vld [vmem:[%s757_s3 + $0x8] sm:$0xff]  ;;  %s585_s1 = smov [#allocation5]  }
  0x12   :  { %461 = vmatprep.subr.mxu0 %v583_v0  ;;  %480 = vmatprep.subr.mxu1 %v583_v0  ;;  %v48_v10 = vld [vmem:[#allocation2] sm:$0x3]  ;;  %v230_v19 = vld [vmem:[%s759_s5 + $0x18] sm:$0xff]  ;;  %v229_v20 = vld [vmem:[%s759_s5 + $0x10] sm:$0xff]  ;;  %s404_s17 = sshll.u32 %s585_s1, 4  ;;  %s405_s17 = int_to_ptr.vmem [resolvable:$true] %s404_s17 }
  0x13   :  { %462 = vmatpush3.msra.mxu0 %v55_v2  ;;  %481 = vmatpush3.msra.mxu1 %v141_v11  ;;  %v139_v13 = vld [vmem:[%s757_s3] sm:$0xff]  ;;  %v228_v21 = vld [vmem:[%s759_s5 + $0x8] sm:$0xff]  ;;  %v315_v23 = vld [vmem:[%s761_s7 + $0x18] sm:$0xff]  ;;  %s536_s18 = scalar_lea.vmem %s405_s17, 32  ;;  %p541_p6 = scmp.lt.s32.totalorder %s405_s17, %s405_s17 }
  0x14   :  { %463 = vmatprep.subr.mxu0 %v583_v0  ;;  %482 = vmatprep.subr.mxu1 %v583_v0  ;;  %v427_v14 = vld [vmem:[%s756_s2] ss:$0 sm:$0xff]  ;;  %v314_v29 = vld [vmem:[%s761_s7 + $0x10] sm:$0xff]  ;;  %v313_v30 = vld [vmem:[%s761_s7 + $0x8] sm:$0xff]  ;;  %p537_p5 = scmp.ne.s32.totalorder %s405_s17, %s536_s18  ;;  %p542_p7 = scmp.lt.s32.totalorder %s536_s18, %s536_s18 }
  0x15   :  { %464 = vmatpush3.msra.mxu0 %v54_v3  ;;  %483 = vmatpush3.msra.mxu1 %v140_v12  ;;  %v227_v22 = vld [vmem:[%s759_s5] sm:$0xff] }
  0x16   :  { %465 = vmatprep.subr.mxu0 %v583_v0  ;;  %484 = vmatprep.subr.mxu1 %v583_v0  ;;  %v429_v24 = vld [vmem:[%s758_s4] ss:$0 sm:$0xff]  ;;  %p543_p8 = por %p542_p7, %p541_p6 }
  0x17   :  { %466 = vmatpush3.msra.mxu0 %v53_v5  ;;  %485 = vmatpush3.msra.mxu1 %v139_v13  ;;  %v312_v31 = vld [vmem:[%s761_s7] sm:$0xff] }
  0x18   :  { %467 = vmatprep.subr.mxu0 %v583_v0  ;;  %489 = vmatprep.subr.mxu1 %v583_v0  ;;  %v431_v32 = vld [vmem:[%s760_s6] ss:$0 sm:$0xff]  ;;  %p544_p9 = pnand %p543_p8, %p537_p5 }
  0x19   :  { %468 = vmatpush3.msra.mxu0 %v52_v6 }
  0x1a   :  { %469 = vmatprep.subr.mxu0 %v583_v0 }
  0x1b   :  { %470 = vmatpush3.msra.mxu0 %v51_v7 }
  0x1c   :  { %471 = vmatprep.subr.mxu0 %v583_v0 }
  0x1d   :  { %472 = vmatpush3.msra.mxu0 %v50_v8 }
  0x1e   :  { %473 = vmatprep.subr.mxu0 %v583_v0 }
  0x1f   :  { %474 = vmatpush3.msra.mxu0 %v49_v9 }
  0x20   :  { %476 = vmatmul.mubr.msk.f32.vlgmr.msra.gmra.mxu0 %vm64_vm1, %v48_v10  ;;  %500 = vmatprep.subr.mxu0 %v583_v0 }
  0x21   :  { %508 = vmatprep.mubr.msk.f32.mxu0 %vm584_vm0, %v583_v0  ;;  %501 = vmatpush3.msra.mxu0 %v315_v23 }
  0x22   :  { %502 = vmatprep.subr.mxu0 %v583_v0 }
  0x23   :  { %503 = vmatpush3.msra.mxu0 %v314_v29 }
  0x24   :  { %504 = vmatprep.subr.mxu0 %v583_v0 }
  0x25   :  { %505 = vmatpush3.msra.mxu0 %v313_v30 }
  0x26   :  { %506 = vmatprep.subr.mxu0 %v583_v0 }
  0x27   :  { %507 = vmatpush3.msra.mxu0 %v312_v31 }
  0xe0   :  { %v134_v15 = vpop.f32.mrf.mxu0 }
  0xe1   :  { %v135_v16 = vadd.f32 %v427_v14, %v134_v15 }
  0xe2   :  { %v477_v17 = vpop.f32.mrf.mxu0 }
  0xe3   :  { %v138_v18 = vmax.f32 %v135_v16, 0.0 }
  0xe5   :  { %487 = vmatmul.mubr.msk.f32.vlgmr.msra.gmra.mxu1 %vm150_vm2, %v138_v18 }
  0xe6   :  { %490 = vmatpush3.msra.mxu1 %v230_v19  ;;  %497 = vmatprep.mubr.msk.f32.mxu1 %vm584_vm0, %v583_v0 }
  0xe7   :  { %491 = vmatprep.subr.mxu1 %v583_v0 }
  0xe8   :  { %492 = vmatpush3.msra.mxu1 %v229_v20 }
  0xe9   :  { %493 = vmatprep.subr.mxu1 %v583_v0 }
  0xea   :  { %494 = vmatpush3.msra.mxu1 %v228_v21 }
  0xeb   :  { %495 = vmatprep.subr.mxu1 %v583_v0 }
  0xec   :  { %496 = vmatpush3.msra.mxu1 %v227_v22 }
 0x1a5   :  { %v220_v25 = vpop.f32.mrf.mxu1 }
 0x1a6   :  { %v221_v26 = vadd.f32 %v429_v24, %v220_v25 }
 0x1a7   :  { %v488_v27 = vpop.f32.mrf.mxu1 }
 0x1a8   :  { %v224_v28 = vmax.f32 %v221_v26, 0.0 }
 0x1aa   :  { %498 = vmatmul.mubr.msk.f32.vlgmr.msra.gmra.mxu1 %vm150_vm2, %v224_v28  ;;  %226 = vst.msk [vmem:[#allocation5] sm:$0x3] %vm225_vm3, %v224_v28 }
 0x26a   :  { %v307_v33 = vpop.f32.mrf.mxu1 }
 0x26b   :  { %v308_v34 = vadd.f32 %v431_v32, %v307_v33 }
 0x26c   :  { %v499_v35 = vpop.f32.mrf.mxu1 }
 0x26d   :  { %v311_v36 = vmax.f32 %v308_v34, 0.0 }
 0x26f   :  { %509 = vmatmul.mubr.msk.f32.vlgmr.msra.gmra.mxu0 %vm150_vm2, %v311_v36 }
 0x270   :  { %547 = shalt.err (!%p544_p9)
}
 0x271   :  { %407 = dma.vmem_to_hbm [thread:$0]  %s405_s17, 32, %s763_s9, [#allocation4]   ;;  %v433_v37 = vld [vmem:[%s762_s8] ss:$0 sm:$0xff]  ;;  %vm396_vm4 = vcmask 517120  }
 0x272   :  { %s586_s0 = smov [#allocation6]  }
 0x273   :  { %s414_s21 = sshll.u32 %s586_s0, 4  ;;  %s415_s21 = int_to_ptr.vmem [resolvable:$true] %s414_s21 }
 0x274   :  { %s556_s22 = scalar_lea.vmem %s415_s21, 32  ;;  %p561_p11 = scmp.lt.s32.totalorder %s415_s21, %s415_s21 }
 0x275   :  { %p557_p10 = scmp.ne.s32.totalorder %s415_s21, %s556_s22  ;;  %p562_p12 = scmp.lt.s32.totalorder %s556_s22, %s556_s22 }
 0x277   :  { %p563_p13 = por %p562_p12, %p561_p11 }
 0x279   :  { %p564_p0 = pnand %p563_p13, %p557_p10 }
 0x32f   :  { %v392_v38 = vpop.f32.mrf.mxu0 }
 0x330   :  { %v393_v39 = vadd.f32 %v433_v37, %v392_v38 }
 0x331   :  { %v510_v40 = vpop.f32.mrf.mxu0 }
 0x332   :  { %397 = vst.msk [vmem:[#allocation6] sm:$0x3] %vm396_vm4, %v393_v39 }
 0x333   :  { %567 = shalt.err (!%p564_p0)
}
 0x334   :  { %417 = dma.vmem_to_hbm [thread:$0]  %s415_s21, 32, %s764_s10, [#allocation7]  }
 0x335   :  { %578 = dma.done.wait [#allocation4], 32  }
 0x336   :  { %579 = vsyncadd [#allocation4], 4294967264 }
 0x337   :  { %580 = dma.done.wait [#allocation7], 32  }
 0x338   :  { %581 = vsyncadd [#allocation7], 4294967264 }
 0x339   :  { %424 = vsyncpa [#allocation3], 1 }
 0x33a   :  { %425 = vsyncpa [#allocation4], 1 }
 0x33b   :  { %426 = vsyncpa [#allocation7], 1 }

// kernel: tpu_custom_call.1
= control target key start
LH: loop header
LB: loop body
LE: loop exit
PB: predicated region body
PF: predicated region fallthrough
CT: control target
= control target key end

     0   :  { %16 = vsyncpa [#allocation3], 0  ;;  %s754_s0 = inlined_call_operand.hbm [shape: f32[2,64], index: 0, kind: input, shape index: {}]   ;;  %s755_s1 = inlined_call_operand.vmem [shape: f32[64,32], index: 1, kind: input, shape index: {}]   ;;  %s756_s2 = inlined_call_operand.vmem [shape: f32[1,32], index: 2, kind: input, shape index: {}]   ;;  %s757_s3 = inlined_call_operand.vmem [shape: f32[32,32], index: 3, kind: input, shape index: {}]   ;;  %s758_s4 = inlined_call_operand.vmem [shape: f32[1,32], index: 4, kind: input, shape index: {}]   ;;  %s759_s5 = inlined_call_operand.vmem [shape: f32[32,32], index: 5, kind: input, shape index: {}]   ;;  %s760_s6 = inlined_call_operand.vmem [shape: f32[1,32], index: 6, kind: input, shape index: {}]   ;;  %s761_s7 = inlined_call_operand.vmem [shape: f32[32,64], index: 7, kind: input, shape index: {}]   ;;  %s762_s8 = inlined_call_operand.vmem [shape: f32[1,64], index: 8, kind: input, shape index: {}]   ;;  %s763_s9 = inlined_call_operand.hbm [shape: f32[2,32], index: 9, kind: output, shape index: {0}]   ;;  %s764_s10 = inlined_call_operand.hbm [shape: f32[2,64], index: 10, kind: output, shape index: {1}]  }
   0x1   :  { %17 = vsyncpa [#allocation4], 0 }
   0x2   :  { %18 = vsyncpa [#allocation7], 0  ;;  %s582_s13 = smov [#allocation2]  }
   0x3   :  { %s25_s14 = sshll.u32 %s582_s13, 4  ;;  %s26_s14 = int_to_ptr.vmem [resolvable:$true] %s25_s14 }
   0x4   :  { %s524_s15 = scalar_lea.vmem %s26_s14, 32  ;;  %p529_p1 = scmp.lt.s32.totalorder %s26_s14, %s26_s14 }
   0x5   :  { %p525_p0 = scmp.ne.s32.totalorder %s26_s14, %s524_s15  ;;  %p530_p2 = scmp.lt.s32.totalorder %s524_s15, %s524_s15 }
   0x7   :  { %p531_p3 = por %p530_p2, %p529_p1 }
   0x9   :  { %p532_p4 = pnand %p531_p3, %p525_p0 }
   0xb   :  { %535 = shalt.err (!%p532_p4)
}
   0xc   :  { %28 = dma.hbm_to_vmem [thread:$0]  %s754_s0, 32, %s26_s14, [#allocation3]  }
   0xd   :  { %576 = dma.done.wait [#allocation3], 32  }
   0xe   :  { %577 = vsyncadd [#allocation3], 4294967264  ;;  %v583_v0 = vmov 0.0   ;;  %vm584_vm0 = vmmov 0   ;;  %v56_v1 = vld [vmem:[%s755_s1 + $0x38] sm:$0xff]  ;;  %v55_v2 = vld [vmem:[%s755_s1 + $0x30] sm:$0xff] }
   0xf   :  { %459 = vmatprep.subr.mxu0 %v583_v0  ;;  %475 = vmatprep.mubr.msk.f32.mxu0 %vm584_vm0, %v583_v0  ;;  %v54_v3 = vld [vmem:[%s755_s1 + $0x28] sm:$0xff]  ;;  %v142_v4 = vld [vmem:[%s757_s3 + $0x18] sm:$0xff]  ;;  %v53_v5 = vld [vmem:[%s755_s1 + $0x20] sm:$0xff]  ;;  %vm64_vm1 = vcmask 523264   ;;  %vm150_vm2 = vcmask 261120   ;;  %vm225_vm3 = vcmask 254976  }
  0x10   :  { %478 = vmatprep.subr.mxu1 %v583_v0  ;;  %486 = vmatprep.mubr.msk.f32.mxu1 %vm584_vm0, %v583_v0  ;;  %v52_v6 = vld [vmem:[%s755_s1 + $0x18] sm:$0xff]  ;;  %v51_v7 = vld [vmem:[%s755_s1 + $0x10] sm:$0xff]  ;;  %v50_v8 = vld [vmem:[%s755_s1 + $0x8] sm:$0xff] }
  0x11   :  { %460 = vmatpush3.msra.mxu0 %v56_v1  ;;  %479 = vmatpush3.msra.mxu1 %v142_v4  ;;  %v49_v9 = vld [vmem:[%s755_s1] sm:$0xff]  ;;  %v141_v11 = vld [vmem:[%s757_s3 + $0x10] sm:$0xff]  ;;  %v140_v12 = vld [vmem:[%s757_s3 + $0x8] sm:$0xff]  ;;  %s585_s1 = smov [#allocation5]  }
  0x12   :  { %461 = vmatprep.subr.mxu0 %v583_v0  ;;  %480 = vmatprep.subr.mxu1 %v583_v0  ;;  %v48_v10 = vld [vmem:[#allocation2] sm:$0x3]  ;;  %v230_v19 = vld [vmem:[%s759_s5 + $0x18] sm:$0xff]  ;;  %v229_v20 = vld [vmem:[%s759_s5 + $0x10] sm:$0xff]  ;;  %s404_s17 = sshll.u32 %s585_s1, 4  ;;  %s405_s17 = int_to_ptr.vmem [resolvable:$true] %s404_s17 }
  0x13   :  { %462 = vmatpush3.msra.mxu0 %v55_v2  ;;  %481 = vmatpush3.msra.mxu1 %v141_v11  ;;  %v139_v13 = vld [vmem:[%s757_s3] sm:$0xff]  ;;  %v228_v21 = vld [vmem:[%s759_s5 + $0x8] sm:$0xff]  ;;  %v315_v23 = vld [vmem:[%s761_s7 + $0x18] sm:$0xff]  ;;  %s536_s18 = scalar_lea.vmem %s405_s17, 32  ;;  %p541_p6 = scmp.lt.s32.totalorder %s405_s17, %s405_s17 }
  0x14   :  { %463 = vmatprep.subr.mxu0 %v583_v0  ;;  %482 = vmatprep.subr.mxu1 %v583_v0  ;;  %v427_v14 = vld [vmem:[%s756_s2] ss:$0 sm:$0xff]  ;;  %v314_v29 = vld [vmem:[%s761_s7 + $0x10] sm:$0xff]  ;;  %v313_v30 = vld [vmem:[%s761_s7 + $0x8] sm:$0xff]  ;;  %p537_p5 = scmp.ne.s32.totalorder %s405_s17, %s536_s18  ;;  %p542_p7 = scmp.lt.s32.totalorder %s536_s18, %s536_s18 }
  0x15   :  { %464 = vmatpush3.msra.mxu0 %v54_v3  ;;  %483 = vmatpush3.msra.mxu1 %v140_v12  ;;  %v227_v22 = vld [vmem:[%s759_s5] sm:$0xff] }
  0x16   :  { %465 = vmatprep.subr.mxu0 %v583_v0  ;;  %484 = vmatprep.subr.mxu1 %v583_v0  ;;  %v429_v24 = vld [vmem:[%s758_s4] ss:$0 sm:$0xff]  ;;  %p543_p8 = por %p542_p7, %p541_p6 }
  0x17   :  { %466 = vmatpush3.msra.mxu0 %v53_v5  ;;  %485 = vmatpush3.msra.mxu1 %v139_v13  ;;  %v312_v31 = vld [vmem:[%s761_s7] sm:$0xff] }
  0x18   :  { %467 = vmatprep.subr.mxu0 %v583_v0  ;;  %489 = vmatprep.subr.mxu1 %v583_v0  ;;  %v431_v32 = vld [vmem:[%s760_s6] ss:$0 sm:$0xff]  ;;  %p544_p9 = pnand %p543_p8, %p537_p5 }
  0x19   :  { %468 = vmatpush3.msra.mxu0 %v52_v6 }
  0x1a   :  { %469 = vmatprep.subr.mxu0 %v583_v0 }
  0x1b   :  { %470 = vmatpush3.msra.mxu0 %v51_v7 }
  0x1c   :  { %471 = vmatprep.subr.mxu0 %v583_v0 }
  0x1d   :  { %472 = vmatpush3.msra.mxu0 %v50_v8 }
  0x1e   :  { %473 = vmatprep.subr.mxu0 %v583_v0 }
  0x1f   :  { %474 = vmatpush3.msra.mxu0 %v49_v9 }
  0x20   :  { %476 = vmatmul.mubr.msk.f32.vlgmr.msra.gmra.mxu0 %vm64_vm1, %v48_v10  ;;  %500 = vmatprep.subr.mxu0 %v583_v0 }
  0x21   :  { %508 = vmatprep.mubr.msk.f32.mxu0 %vm584_vm0, %v583_v0  ;;  %501 = vmatpush3.msra.mxu0 %v315_v23 }
  0x22   :  { %502 = vmatprep.subr.mxu0 %v583_v0 }
  0x23   :  { %503 = vmatpush3.msra.mxu0 %v314_v29 }
  0x24   :  { %504 = vmatprep.subr.mxu0 %v583_v0 }
  0x25   :  { %505 = vmatpush3.msra.mxu0 %v313_v30 }
  0x26   :  { %506 = vmatprep.subr.mxu0 %v583_v0 }
  0x27   :  { %507 = vmatpush3.msra.mxu0 %v312_v31 }
  0xe0   :  { %v134_v15 = vpop.f32.mrf.mxu0 }
  0xe1   :  { %v135_v16 = vadd.f32 %v427_v14, %v134_v15 }
  0xe2   :  { %v477_v17 = vpop.f32.mrf.mxu0 }
  0xe3   :  { %v138_v18 = vmax.f32 %v135_v16, 0.0 }
  0xe5   :  { %487 = vmatmul.mubr.msk.f32.vlgmr.msra.gmra.mxu1 %vm150_vm2, %v138_v18 }
  0xe6   :  { %490 = vmatpush3.msra.mxu1 %v230_v19  ;;  %497 = vmatprep.mubr.msk.f32.mxu1 %vm584_vm0, %v583_v0 }
  0xe7   :  { %491 = vmatprep.subr.mxu1 %v583_v0 }
  0xe8   :  { %492 = vmatpush3.msra.mxu1 %v229_v20 }
  0xe9   :  { %493 = vmatprep.subr.mxu1 %v583_v0 }
  0xea   :  { %494 = vmatpush3.msra.mxu1 %v228_v21 }
  0xeb   :  { %495 = vmatprep.subr.mxu1 %v583_v0 }
  0xec   :  { %496 = vmatpush3.msra.mxu1 %v227_v22 }
 0x1a5   :  { %v220_v25 = vpop.f32.mrf.mxu1 }
 0x1a6   :  { %v221_v26 = vadd.f32 %v429_v24, %v220_v25 }
 0x1a7   :  { %v488_v27 = vpop.f32.mrf.mxu1 }
 0x1a8   :  { %v224_v28 = vmax.f32 %v221_v26, 0.0 }
 0x1aa   :  { %498 = vmatmul.mubr.msk.f32.vlgmr.msra.gmra.mxu1 %vm150_vm2, %v224_v28  ;;  %226 = vst.msk [vmem:[#allocation5] sm:$0x3] %vm225_vm3, %v224_v28 }
 0x26a   :  { %v307_v33 = vpop.f32.mrf.mxu1 }
 0x26b   :  { %v308_v34 = vadd.f32 %v431_v32, %v307_v33 }
 0x26c   :  { %v499_v35 = vpop.f32.mrf.mxu1 }
 0x26d   :  { %v311_v36 = vmax.f32 %v308_v34, 0.0 }
 0x26f   :  { %509 = vmatmul.mubr.msk.f32.vlgmr.msra.gmra.mxu0 %vm150_vm2, %v311_v36 }
 0x270   :  { %547 = shalt.err (!%p544_p9)
}
 0x271   :  { %407 = dma.vmem_to_hbm [thread:$0]  %s405_s17, 32, %s763_s9, [#allocation4]   ;;  %v433_v37 = vld [vmem:[%s762_s8] ss:$0 sm:$0xff]  ;;  %vm396_vm4 = vcmask 517120  }
 0x272   :  { %s586_s0 = smov [#allocation6]  }
 0x273   :  { %s414_s21 = sshll.u32 %s586_s0, 4  ;;  %s415_s21 = int_to_ptr.vmem [resolvable:$true] %s414_s21 }
 0x274   :  { %s556_s22 = scalar_lea.vmem %s415_s21, 32  ;;  %p561_p11 = scmp.lt.s32.totalorder %s415_s21, %s415_s21 }
 0x275   :  { %p557_p10 = scmp.ne.s32.totalorder %s415_s21, %s556_s22  ;;  %p562_p12 = scmp.lt.s32.totalorder %s556_s22, %s556_s22 }
 0x277   :  { %p563_p13 = por %p562_p12, %p561_p11 }
 0x279   :  { %p564_p0 = pnand %p563_p13, %p557_p10 }
 0x32f   :  { %v392_v38 = vpop.f32.mrf.mxu0 }
 0x330   :  { %v393_v39 = vadd.f32 %v433_v37, %v392_v38 }
 0x331   :  { %v510_v40 = vpop.f32.mrf.mxu0 }
 0x332   :  { %397 = vst.msk [vmem:[#allocation6] sm:$0x3] %vm396_vm4, %v393_v39 }
 0x333   :  { %567 = shalt.err (!%p564_p0)
}
 0x334   :  { %417 = dma.vmem_to_hbm [thread:$0]  %s415_s21, 32, %s764_s10, [#allocation7]  }
 0x335   :  { %578 = dma.done.wait [#allocation4], 32  }
 0x336   :  { %579 = vsyncadd [#allocation4], 4294967264 }
 0x337   :  { %580 = dma.done.wait [#allocation7], 32  }
 0x338   :  { %581 = vsyncadd [#allocation7], 4294967264 }
 0x339   :  { %424 = vsyncpa [#allocation3], 1 }
 0x33a   :  { %425 = vsyncpa [#allocation4], 1 }
 0x33b   :  { %426 = vsyncpa [#allocation7], 1 }

</bundles_post_ra>
